<compile_context>
chip_gen: v6e
topology: v6e:2x2x1
jax: 0.10.0
libtpu: 0.0.40
codegen_flags: <defaults>
</compile_context>

<pallas_src>
import jax
import jax.numpy as jnp
from jax.experimental import pallas as pl
from jax.experimental.pallas import tpu as pltpu


# ---------------------------------------------------------------------------
# Kernels
# ---------------------------------------------------------------------------

def _senet_single_pass_kernel(x_ref, w1_ref, b1_ref, w2_ref, b2_ref, o_ref):
    # x_ref:  (TB, Ci, Lp) native dtype
    # w1_ref: (Ci, Cm) f32 (pre-transposed, pre-scaled by 1/L)
    # b1_ref: (1, Cm)  f32
    # w2_ref: (Cm, Ci) f32 (pre-transposed)
    # b2_ref: (1, Ci)  f32
    # o_ref:  (TB, Ci, Lp)

    # Squeeze: sum over L with f32 accumulation (the average pool's 1/L is in w1).
    pooled = jnp.sum(x_ref[...], axis=-1, dtype=jnp.float32)             # (TB, Ci)

    # Excitation MLP (tiny, f32): Linear -> ReLU -> Linear -> Sigmoid.
    h = jnp.dot(pooled, w1_ref[...],
                preferred_element_type=jnp.float32) + b1_ref[...]        # (TB, Cm)
    h = jnp.maximum(h, 0.0)
    z = jnp.dot(h, w2_ref[...],
                preferred_element_type=jnp.float32) + b2_ref[...]        # (TB, Ci)
    gate = jax.nn.sigmoid(z).astype(o_ref.dtype)                         # (TB, Ci)

    # Scale: re-read x from VMEM (vld has spare slots; avoids keeping a multi-MiB
    # temp live across the MLP) and multiply in the input's native dtype.
    o_ref[...] = (x_ref[...] * gate[:, :, None]).astype(o_ref.dtype)


def _senet_gate_kernel(x_ref, w1_ref, b1_ref, w2_ref, b2_ref, gate_ref, acc_ref):
    # Two-pass path, pass 1: L-tiled pooled-sum reduction + gate MLP on finalize.
    # x_ref: (1, Ci, tl); gate_ref: (1, 1, Ci) f32; acc_ref: (1, Ci) f32 scratch.
    l = pl.program_id(1)

    @pl.when(l == 0)
    def _init():
        acc_ref[...] = jnp.zeros_like(acc_ref)

    acc_ref[...] += jnp.sum(x_ref[...], axis=-1, dtype=jnp.float32)      # (1, Ci)

    @pl.when(l == pl.num_programs(1) - 1)
    def _finalize():
        pooled = acc_ref[...]                                            # (1, Ci)
        h = jnp.dot(pooled, w1_ref[...],
                    preferred_element_type=jnp.float32) + b1_ref[...]
        h = jnp.maximum(h, 0.0)
        z = jnp.dot(h, w2_ref[...],
                    preferred_element_type=jnp.float32) + b2_ref[...]    # (1, Ci)
        gate_ref[...] = jax.nn.sigmoid(z)[:, None, :]                    # (1, 1, Ci)


def _senet_scale_kernel(x_ref, gate_ref, o_ref):
    # Two-pass path, pass 2: streaming broadcast-multiply.
    # x_ref/o_ref: (1, Ci, tl); gate_ref: (1, 1, Ci) f32.
    g = gate_ref[...][:, 0, :].astype(o_ref.dtype)                       # (1, Ci)
    o_ref[...] = (x_ref[...] * g[:, :, None]).astype(o_ref.dtype)


# ---------------------------------------------------------------------------
# Wrapper
# ---------------------------------------------------------------------------

def _vmem_budgets():
    """Generation-aware (tile_budget_bytes, vmem_limit_cap_bytes)."""
    try:
        vmem_cap = int(pltpu.get_tpu_info().vmem_capacity_bytes)
    except Exception:
        vmem_cap = 64 * 1024 * 1024  # conservative (v7x-sized)
    if vmem_cap >= 100 * 1024 * 1024:
        # v5e / v6e: 128 MiB physical VMEM -> bigger streaming buffers, fewer steps.
        return 48 * 1024 * 1024, 96 * 1024 * 1024
    # v7x: 64 MiB physical per TensorCore -> leave headroom for Mosaic scratch.
    return 24 * 1024 * 1024, min(52 * 1024 * 1024, int(0.8 * vmem_cap))


def senet_block(x, w1, b1, w2, b2, *, force_two_pass=False):
    """x: (B, Ci, L); w1: (Cm, Ci); b1: (Cm,); w2: (Ci, Cm); b2: (Ci,)."""
    B, Ci, L = x.shape
    Cm = w1.shape[0]
    itemsize = x.dtype.itemsize

    tile_budget, vmem_cap_limit = _vmem_budgets()

    # Pre-transpose PyTorch-style (out, in) weights so the kernel does plain x @ W,
    # and fold the average pool's 1/L into W1 (sum-then-scaled-matmul == mean-matmul;
    # rounding differs slightly from the reference, fine at 1e-5 for moderate L).
    w1t = jnp.transpose(w1).astype(jnp.float32) * jnp.float32(1.0 / L)   # (Ci, Cm)
    w2t = jnp.transpose(w2).astype(jnp.float32)                          # (Cm, Ci)
    b1_2d = b1.reshape(1, Cm).astype(jnp.float32)
    b2_2d = b2.reshape(1, Ci).astype(jnp.float32)

    # Lane-dense stores: pad L to a multiple of 128 (zero pad is exact: zeros add 0
    # to the pooled sum and the padded output columns are sliced off).
    Lp = ((L + 127) // 128) * 128
    xp = x if Lp == L else jnp.pad(x, ((0, 0), (0, 0), (0, Lp - L)))

    bytes_per_row = Ci * Lp * itemsize
    weight_bytes = 4 * (Ci * Cm + Cm + Cm * Ci + Ci)

    single_pass = (4 * bytes_per_row <= tile_budget) and not force_two_pass

    if single_pass:
        # --- single pass: pool + MLP + scale per batch tile ------------------
        # Keep >= ~4 grid steps so input/compute/output DMAs overlap and v7x can
        # shard the batch axis over both TensorCores; cap TB by the VMEM budget
        # (2 input + 2 output double-buffers of (TB, Ci, Lp)).
        min_steps = 4
        max_tb_vmem = max(1, tile_budget // (4 * bytes_per_row))
        max_tb_steps = max(1, pl.cdiv(B, min_steps))
        tb = int(max(1, min(B, max_tb_vmem, max_tb_steps)))
        grid = (pl.cdiv(B, tb),)  # ragged last batch block is harmless (rows independent)

        vmem_needed = 4 * tb * bytes_per_row + 2 * weight_bytes
        vmem_limit = int(min(vmem_cap_limit,
                             max(32 * 1024 * 1024, int(1.5 * vmem_needed))))

        out = pl.pallas_call(
            _senet_single_pass_kernel,
            out_shape=jax.ShapeDtypeStruct((B, Ci, Lp), x.dtype),
            grid=grid,
            in_specs=[
                pl.BlockSpec((tb, Ci, Lp), lambda b: (b, 0, 0)),   # streaming x
                pl.BlockSpec((Ci, Cm), lambda b: (0, 0)),          # resident weights
                pl.BlockSpec((1, Cm), lambda b: (0, 0)),
                pl.BlockSpec((Cm, Ci), lambda b: (0, 0)),
                pl.BlockSpec((1, Ci), lambda b: (0, 0)),
            ],
            out_specs=pl.BlockSpec((tb, Ci, Lp), lambda b: (b, 0, 0)),
            compiler_params=pltpu.CompilerParams(
                dimension_semantics=("parallel",),
                vmem_limit_bytes=vmem_limit,
            ),
        )(xp, w1t, b1_2d, w2t, b2_2d)
    else:
        # --- two passes: L-tiled pooled-sum/gate, then streaming scale -------
        # L tile: largest multiple of 128 dividing Lp that keeps 4 double-buffered
        # (1, Ci, tl) blocks under the tile budget (floor of 128 always divides Lp).
        max_units = max(1, tile_budget // (4 * Ci * 128 * itemsize))
        tl = 128
        for k in range(min(max_units, Lp // 128), 0, -1):
            if Lp % (k * 128) == 0:
                tl = k * 128
                break
        n_l = Lp // tl

        vmem_needed = 4 * Ci * tl * itemsize + 2 * weight_bytes + 8 * Ci * 4
        vmem_limit = int(min(vmem_cap_limit,
                             max(32 * 1024 * 1024, int(1.5 * vmem_needed))))

        gate = pl.pallas_call(
            _senet_gate_kernel,
            out_shape=jax.ShapeDtypeStruct((B, 1, Ci), jnp.float32),
            grid=(B, n_l),
            in_specs=[
                pl.BlockSpec((1, Ci, tl), lambda b, l: (b, 0, l)),
                pl.BlockSpec((Ci, Cm), lambda b, l: (0, 0)),
                pl.BlockSpec((1, Cm), lambda b, l: (0, 0)),
                pl.BlockSpec((Cm, Ci), lambda b, l: (0, 0)),
                pl.BlockSpec((1, Ci), lambda b, l: (0, 0)),
            ],
            out_specs=pl.BlockSpec((1, 1, Ci), lambda b, l: (b, 0, 0)),
            scratch_shapes=[pltpu.VMEM((1, Ci), jnp.float32)],
            compiler_params=pltpu.CompilerParams(
                dimension_semantics=("parallel", "arbitrary"),
                vmem_limit_bytes=vmem_limit,
            ),
        )(xp, w1t, b1_2d, w2t, b2_2d)

        out = pl.pallas_call(
            _senet_scale_kernel,
            out_shape=jax.ShapeDtypeStruct((B, Ci, Lp), x.dtype),
            grid=(B, n_l),
            in_specs=[
                pl.BlockSpec((1, Ci, tl), lambda b, l: (b, 0, l)),
                pl.BlockSpec((1, 1, Ci), lambda b, l: (b, 0, 0)),
            ],
            out_specs=pl.BlockSpec((1, Ci, tl), lambda b, l: (b, 0, l)),
            compiler_params=pltpu.CompilerParams(
                dimension_semantics=("parallel", "parallel"),
                vmem_limit_bytes=vmem_limit,
            ),
        )(xp, gate)

    return out if Lp == L else out[:, :, :L]


# ---------------------------------------------------------------------------
# Reference & test
# ---------------------------------------------------------------------------

def senet_reference(x, w1, b1, w2, b2):
    pooled = jnp.mean(x.astype(jnp.float32), axis=-1)                    # (B, Ci)
    h = jnp.maximum(pooled @ w1.T.astype(jnp.float32) + b1, 0.0)
    gate = jax.nn.sigmoid(h @ w2.T.astype(jnp.float32) + b2)             # (B, Ci)
    return x * gate[:, :, None].astype(x.dtype)


def _make_inputs(key, B, Ci, L):
    Cm = Ci // 4
    kx, k1, k2, k3, k4 = jax.random.split(key, 5)
    x = jax.random.normal(kx, (B, Ci, L), dtype=jnp.float32)
    w1 = jax.random.normal(k1, (Cm, Ci), dtype=jnp.float32) * 0.1
    b1 = jax.random.normal(k2, (Cm,), dtype=jnp.float32) * 0.1
    w2 = jax.random.normal(k3, (Ci, Cm), dtype=jnp.float32) * 0.1
    b2 = jax.random.normal(k4, (Ci,), dtype=jnp.float32) * 0.1
    return x, w1, b1, w2, b2


if __name__ == "__main__":
    key = jax.random.PRNGKey(0)

    # 1) Single-pass path, lane-aligned L.
    x, w1, b1, w2, b2 = _make_inputs(key, B=4, Ci=32, L=128)
    out = jax.block_until_ready(senet_block(x, w1, b1, w2, b2))
    ref = senet_reference(x, w1, b1, w2, b2)
    assert out.shape == x.shape
    assert jnp.allclose(out, ref, atol=1e-5, rtol=1e-5), "single-pass mismatch"

    # 2) Single-pass path with non-128 L (pad/slice) and ragged batch grid.
    x2, w1b, b1b, w2b, b2b = _make_inputs(jax.random.PRNGKey(1), B=7, Ci=32, L=100)
    out2 = jax.block_until_ready(senet_block(x2, w1b, b1b, w2b, b2b))
    ref2 = senet_reference(x2, w1b, b1b, w2b, b2b)
    assert out2.shape == x2.shape
    assert jnp.allclose(out2, ref2, atol=1e-5, rtol=1e-5), "padded/ragged mismatch"

    # 3) Two-pass (long-L) path forced at small shape to validate the fallback.
    out3 = jax.block_until_ready(senet_block(x, w1, b1, w2, b2, force_two_pass=True))
    assert jnp.allclose(out3, ref, atol=1e-5, rtol=1e-5), "two-pass mismatch"

    print("KERNEL_OK")
</pallas_src>

<mosaic_0001>
module attributes {stable_mosaic.version = 11 : i64} {
  func.func @_senet_single_pass_kernel(%arg0: i32, %arg1: memref<1x32x128xf32, #tpu.memory_space<vmem>>, %arg2: memref<32x8xf32, #tpu.memory_space<vmem>>, %arg3: memref<1x8xf32, #tpu.memory_space<vmem>>, %arg4: memref<8x32xf32, #tpu.memory_space<vmem>>, %arg5: memref<1x32xf32, #tpu.memory_space<vmem>>, %arg6: memref<1x32x128xf32, #tpu.memory_space<vmem>>) attributes {dimension_semantics = [#tpu.dimension_semantics<parallel>], iteration_bounds = array<i64: 4>, scalar_prefetch = 0 : i64, scratch_operands = 0 : i64, tpu.core_type = #tpu.core_type<tc>, window_params = [{transform_indices = @transform_0, window_bounds = array<i64: 1, 32, 128>}, {pipeline_mode = #tpu.pipeline_mode<synchronous>, transform_indices = @transform_1, window_bounds = array<i64: 32, 8>}, {pipeline_mode = #tpu.pipeline_mode<synchronous>, transform_indices = @transform_2, window_bounds = array<i64: 1, 8>}, {pipeline_mode = #tpu.pipeline_mode<synchronous>, transform_indices = @transform_3, window_bounds = array<i64: 8, 32>}, {pipeline_mode = #tpu.pipeline_mode<synchronous>, transform_indices = @transform_4, window_bounds = array<i64: 1, 32>}, {transform_indices = @transform_5, window_bounds = array<i64: 1, 32, 128>}]} {
    %c0 = arith.constant 0 : index
    %c0_0 = arith.constant 0 : index
    %c0_1 = arith.constant 0 : index
    %0 = vector.load %arg1[%c0, %c0_0, %c0_1] : memref<1x32x128xf32, #tpu.memory_space<vmem>>, vector<1x32x128xf32>
    %cst = arith.constant dense<0.000000e+00> : vector<1x32xf32>
    %1 = vector.multi_reduction <add>, %0, %cst [2] : vector<1x32x128xf32> to vector<1x32xf32>
    %c0_2 = arith.constant 0 : index
    %c0_3 = arith.constant 0 : index
    %2 = vector.load %arg2[%c0_2, %c0_3] : memref<32x8xf32, #tpu.memory_space<vmem>>, vector<32x8xf32>
    %cst_4 = arith.constant dense<0.000000e+00> : vector<1x8xf32>
    %3 = tpu.matmul %1, %2, %cst_4 {dimension_numbers = #tpu.dot_dimension_numbers<[1], [0], [0], [1], [0, 0, 1, 1], [], []>} : vector<1x32xf32>, vector<32x8xf32>, vector<1x8xf32> -> vector<1x8xf32>
    %c0_5 = arith.constant 0 : index
    %c0_6 = arith.constant 0 : index
    %4 = vector.load %arg3[%c0_5, %c0_6] : memref<1x8xf32, #tpu.memory_space<vmem>>, vector<1x8xf32>
    %5 = arith.addf %3, %4 : vector<1x8xf32>
    %cst_7 = arith.constant 0.000000e+00 : f32
    %6 = vector.broadcast %cst_7 : f32 to vector<1x8xf32>
    %7 = arith.maximumf %5, %6 : vector<1x8xf32>
    %c0_8 = arith.constant 0 : index
    %c0_9 = arith.constant 0 : index
    %8 = vector.load %arg4[%c0_8, %c0_9] : memref<8x32xf32, #tpu.memory_space<vmem>>, vector<8x32xf32>
    %cst_10 = arith.constant dense<0.000000e+00> : vector<1x32xf32>
    %9 = tpu.matmul %7, %8, %cst_10 {dimension_numbers = #tpu.dot_dimension_numbers<[1], [0], [0], [1], [0, 0, 1, 1], [], []>} : vector<1x8xf32>, vector<8x32xf32>, vector<1x32xf32> -> vector<1x32xf32>
    %c0_11 = arith.constant 0 : index
    %c0_12 = arith.constant 0 : index
    %10 = vector.load %arg5[%c0_11, %c0_12] : memref<1x32xf32, #tpu.memory_space<vmem>>, vector<1x32xf32>
    %11 = arith.addf %9, %10 : vector<1x32xf32>
    %12 = arith.negf %11 : vector<1x32xf32>
    %13 = math.exp %12 : vector<1x32xf32>
    %cst_13 = arith.constant 1.000000e+00 : f32
    %14 = vector.broadcast %cst_13 : f32 to vector<1x32xf32>
    %15 = arith.addf %14, %13 : vector<1x32xf32>
    %16 = arith.divf %14, %15 : vector<1x32xf32>
    %c0_14 = arith.constant 0 : index
    %c0_15 = arith.constant 0 : index
    %c0_16 = arith.constant 0 : index
    %17 = vector.load %arg1[%c0_14, %c0_15, %c0_16] : memref<1x32x128xf32, #tpu.memory_space<vmem>>, vector<1x32x128xf32>
    %18 = vector.shape_cast %16 : vector<1x32xf32> to vector<1x32x1xf32>
    %19 = vector.broadcast %18 : vector<1x32x1xf32> to vector<1x32x128xf32>
    %20 = arith.mulf %17, %19 : vector<1x32x128xf32>
    %c0_17 = arith.constant 0 : index
    %c0_18 = arith.constant 0 : index
    %c0_19 = arith.constant 0 : index
    %21 = vector.load %arg6[%c0_17, %c0_18, %c0_19] : memref<1x32x128xf32, #tpu.memory_space<vmem>>, vector<1x32x128xf32>
    tpu.vector_store %arg6[%c0_17, %c0_18, %c0_19], %20 {strides = array<i32>} : memref<1x32x128xf32, #tpu.memory_space<vmem>>, vector<1x32x128xf32>,
    return
  }
  func.func @transform_0(%arg0: i32) -> (i32, i32, i32) {
    %c0_i32 = arith.constant 0 : i32
    %c0_i32_0 = arith.constant 0 : i32
    %c0_i32_1 = arith.constant 0 : i32
    return %arg0, %c0_i32, %c0_i32_0 : i32, i32, i32
  }
  func.func @transform_1(%arg0: i32) -> (i32, i32) {
    %c0_i32 = arith.constant 0 : i32
    %c0_i32_0 = arith.constant 0 : i32
    %c0_i32_1 = arith.constant 0 : i32
    return %c0_i32, %c0_i32_0 : i32, i32
  }
  func.func @transform_2(%arg0: i32) -> (i32, i32) {
    %c0_i32 = arith.constant 0 : i32
    %c0_i32_0 = arith.constant 0 : i32
    %c0_i32_1 = arith.constant 0 : i32
    return %c0_i32, %c0_i32_0 : i32, i32
  }
  func.func @transform_3(%arg0: i32) -> (i32, i32) {
    %c0_i32 = arith.constant 0 : i32
    %c0_i32_0 = arith.constant 0 : i32
    %c0_i32_1 = arith.constant 0 : i32
    return %c0_i32, %c0_i32_0 : i32, i32
  }
  func.func @transform_4(%arg0: i32) -> (i32, i32) {
    %c0_i32 = arith.constant 0 : i32
    %c0_i32_0 = arith.constant 0 : i32
    %c0_i32_1 = arith.constant 0 : i32
    return %c0_i32, %c0_i32_0 : i32, i32
  }
  func.func @transform_5(%arg0: i32) -> (i32, i32, i32) {
    %c0_i32 = arith.constant 0 : i32
    %c0_i32_0 = arith.constant 0 : i32
    %c0_i32_1 = arith.constant 0 : i32
    return %arg0, %c0_i32, %c0_i32_0 : i32, i32, i32
  }
}

</mosaic_0001>

<bundles_post_ra>
// kernel: tpu_custom_call.1
= control target key start
LH: loop header
LB: loop body
LE: loop exit
PB: predicated region body
PF: predicated region fallthrough
CT: control target
= control target key end

     0   :  { %10 = vsyncpa [#allocation3], 0  ;;  %s984_s0 = inlined_call_operand.hbm [shape: f32[4,32,128], index: 0, kind: input, shape index: {}]   ;;  %s985_s1 = inlined_call_operand.vmem [shape: f32[32,8], index: 1, kind: input, shape index: {}]   ;;  %s986_s2 = inlined_call_operand.vmem [shape: f32[1,8], index: 2, kind: input, shape index: {}]   ;;  %s987_s3 = inlined_call_operand.vmem [shape: f32[8,32], index: 3, kind: input, shape index: {}]   ;;  %s988_s4 = inlined_call_operand.vmem [shape: f32[1,32], index: 4, kind: input, shape index: {}]   ;;  %s989_s5 = inlined_call_operand.hbm [shape: f32[4,32,128], index: 5, kind: output, shape index: {}]  }
   0x1   :  { %12 = vsyncpa [#allocation3 + $0x1], 0 }
   0x2   :  { %13 = vsyncpa [#allocation4], 0 }
   0x3   :  { %15 = vsyncpa [#allocation4 + $0x1], 0  ;;  %s791_s18 = smov 0   ;;  %s793_s19 = smov 0  }
   0x4   :  { %s795_s20 = smov 0   ;;  %s797_s21 = smov 0  }
   0x5 LB: > { %s812_s22 = sadd.s32 4294967295, %s751_s21   ;;  %s561_s23 = sadd.s32 4294967294, %s751_s21   ;;  %s751_s21 = sphi %s797_s21, %s1003_s21   ;;  %s747_s20 = sphi %s795_s20, %s1002_s20   ;;  %s743_s19 = sphi %s793_s19, %s1001_s19   ;;  %s739_s18 = sphi %s791_s18, %s1000_s18  }
   0x6   : > { %s816_s24 = sadd.s32 1, %s751_s21   ;;  %s28_s25 = sadd.s32 1, %s747_s20 }
   0x7   : > { %s25_s26 = ssub.s32 %s751_s21, %s816_s24  ;;  %p35_p0 = scmp.ne.s32.totalorder %s747_s20, %s743_s19 }
   0x8   : > { %p26_p1 = scmp.eq.s32.totalorder %s25_s26, 0  ;;  %p36_p2 = scmp.eq.s32.totalorder %s751_s21, 0 }
   0x9   : > { %p41_p3 = scmp.ne.s32.totalorder %s743_s19, %s739_s18  ;;  %p42_p4 = scmp.eq.s32.totalorder %s812_s22, 0 }
   0xa   : > { %s828_s27 = scalar_select %p26_p1, %s747_s20, %s28_s25  }
   0xb   : > { %p830_p5 = por %p36_p2, %p35_p0  ;;  %p834_p6 = por %p42_p4, %p41_p3 }
   0xc   : > { %p149_p7 = scmp.eq.s32.totalorder %s812_s22, 3  ;;  %p155_p8 = scmp.eq.s32.totalorder %s561_s23, 3 }
   0xd   : > { %s993_s29 = scalar_select %p834_p6, 1, 0 }
   0xe   : > { %p615_p9 = scmp.lt.s32.totalorder %s751_s21, 4  ;;  %p840_p10 = por %p149_p7, %p35_p0 }
   0xf   : > { %p844_p11 = por %p155_p8, %p41_p3  ;;  %s187_s7 = sand.u32 1, %s747_s20  }
  0x10   : > { %s994_s30 = scalar_select %p840_p10, 1, 0 }
  0x11   : > { %s995_s6 = scalar_select %p844_p11, 1, 0 }
  0x12   : > { %s578_s8 = sshll.u32 %s751_s21, 9  ;;  %s564_s9 = sshll.u32 %s187_s7, 5 }
  0x13   : > { %s853_s12 = scalar_lea.hbm %s984_s0, %s578_s8  ;;  %s191_s13 = scalar_lea.vmem [#allocation2], %s564_s9 }
  0x14   : > { %s198_s14 = sshll.u32 %s191_s13, 4  ;;  %p857_p12 = pnand %p615_p9, %p830_p5  ;;  %s861_s14 = int_to_ptr.vmem [resolvable:$true] %s198_s14 }
  0x15   : > { %s863_s16 = scalar_lea.sflag [#allocation3], %s187_s7  ;;  %s659_s17 = scalar_lea.hbm %s853_s12, 512 }
  0x16   : > { %p660_p13 = scmp.ne.s32.totalorder %s853_s12, %s659_s17  ;;  %p661_p0 = pneg %p857_p12 }
  0x17   : > { %s664_s26 = scalar_lea.hbm %s984_s0, 2048  ;;  %p665_p3 = scmp.lt.s32.totalorder %s853_s12, %s984_s0 }
  0x18   : > { %p662_p1 = pnand %p661_p0, %p660_p13  ;;  %p666_p4 = scmp.lt.s32.totalorder %s664_s26, %s659_s17 }
  0x1a   : > { %p663_p2 = pneg %p662_p1  ;;  %p667_p5 = por %p666_p4, %p665_p3 }
  0x1c   : > { %p668_p7 = pnand %p667_p5, %p663_p2 }
  0x1e   : > { %671 = shalt.err (!%p668_p7)
}
  0x1f   : > { %s672_s7 = scalar_lea.vmem %s861_s14, 512  ;;  %s753_s9 = smov [#allocation2]  }
  0x20   : > { %p673_p8 = scmp.ne.s32.totalorder %s861_s14, %s672_s7  ;;  %s677_s10 = sshll.u32 %s753_s9, 4  ;;  %s678_s10 = int_to_ptr.vmem [resolvable:$false] %s677_s10 }
  0x21   : > { %s679_s11 = scalar_lea.vmem %s678_s10, 1024  ;;  %p680_p1 = scmp.lt.s32.totalorder %s861_s14, %s678_s10 }
  0x22   : > { %p675_p9 = pnand %p673_p8, %p661_p0  ;;  %p681_p11 = scmp.lt.s32.totalorder %s679_s11, %s672_s7 }
  0x24   : > { %p676_p13 = pneg %p675_p9  ;;  %p682_p10 = por %p681_p11, %p680_p1 }
  0x26   : > { %p683_p6 = pnand %p682_p10, %p676_p13 }
  0x28   : > { %686 = shalt.err (!%p683_p6)
}
  0x29   : > { %s754_s13 = smov 128   ;;  %s755_s17 = smov 8  }
  0x2a   : > { %610 = dma.hbm_to_vmem [thread:$0]  (!%p857_p12), %s853_s12, 512, %s861_s14, %s863_s16, %s754_s13, %s754_s13, %s755_s17  }
  0x2b   : > { %p567_p0 = scmp.ge.s32.totalorder %s751_s21, 1  ;;  %p206_p2 = scmp.lt.s32.totalorder %s751_s21, 5 }
  0x2d   : > { %p207_p3 = pnand %p567_p0, %p206_p2 }
  0x2e   : > { %s887_s23 = sand.u32 (!%p207_p3), 1, %s743_s19   ;;  %p997_p6 = scmp.ne.s32.totalorder (!%p207_p3), %s993_s29, 0 }
  0x2f   : > { %210 = sbr.rel (%p207_p3) target bundleno = 766 (0x2fe), region = 40  ;;  %s568_s25 = sshll.u32 (!%p207_p3), %s887_s23, 5 }
  0x30   : > { %s213_s26 = scalar_lea.sflag (!%p207_p3), [#allocation3], %s887_s23  ;;  %s216_s28 = scalar_lea.vmem (!%p207_p3), [#allocation2], %s568_s25 }
  0x34   : > { %730 = dma.done.wait (%p997_p6), %s213_s26, 512  }
  0x35   : > { %732 = vsyncadd (%p997_p6), %s213_s26, 4294966784  ;;  %v897_v0 = vld [vmem:[%s216_s28] sm:$0xff]  ;;  %v899_v1 = vld [vmem:[%s216_s28 + $0x10] sm:$0xff]  ;;  %v756_v5 = vmov 0.0   ;;  %vm757_vm0 = vmmov 0   ;;  %v264_v9 = vlaneseq  ;;  %vm275_vm1 = vcmask 130112  }
  0x36   : > { %247 = vadd.xlane.f32.xlu0 %v897_v0  ;;  %251 = vadd.xlane.f32.xlu1 %v899_v1  ;;  %v903_v2 = vld [vmem:[%s216_s28 + $0x8] sm:$0xff]  ;;  %v905_v3 = vld [vmem:[%s216_s28 + $0x18] sm:$0xff]  ;;  %v257_v6 = vld [vmem:[%s985_s1 + $0x10] sm:$0xff]  ;;  %vm282_vm2 = vcmask 195712   ;;  %vm289_vm3 = vcmask 261312   ;;  %vm291_vm4 = vcmask 261120  }
  0x37   : > { %v258_v4 = vld [vmem:[%s985_s1 + $0x18] sm:$0xff]  ;;  %587 = vmatprep.subr.mxu0 %v756_v5  ;;  %598 = vmatprep.subr.mxu1 %v756_v5  ;;  %v256_v7 = vld [vmem:[%s985_s1 + $0x8] sm:$0xff]  ;;  %v255_v8 = vld [vmem:[%s985_s1] sm:$0xff]  ;;  %v265_v10 = vand.u32 127, %v264_v9  ;;  %v267_v11 = vshrl.u32 %v264_v9, 7  ;;  %vm367_vm5 = vcmask 64512  }
  0x38   : > { %588 = vmatpush3.msra.mxu0 %v258_v4  ;;  %595 = vmatprep.mubr.msk.f32.mxu0 %vm757_vm0, %v756_v5  ;;  %v365_v30 = vld [vmem:[%s987_s3] sm:$0xff]  ;;  %s242_s12 = scalar_lea.vmem [#allocation5], %s568_s25  ;;  %s579_s29 = sshll.u32 %s812_s22, 9 }
  0x39   : > { %589 = vmatprep.subr.mxu0 %v756_v5  ;;  %600 = vmatprep.mubr.msk.f32.mxu1 %vm757_vm0, %v756_v5  ;;  %v270_v12 = vadd.s32 4294967288, %v265_v10  ;;  %v284_v13 = vadd.s32 4294967272, %v265_v10  ;;  %v277_v14 = vadd.s32 4294967280, %v265_v10  ;;  %v268_v17 = vsub.s32 %v265_v10, %v267_v11  ;;  %v259_v31 = vld [vmem:[%s986_s2] sm:$0x1]  ;;  %s488_s14 = sshll.u32 %s242_s12, 4  ;;  %s941_s8 = scalar_lea.hbm %s989_s5, %s579_s29  ;;  %s936_s14 = int_to_ptr.vmem [resolvable:$true] %s488_s14 }
  0x3a   : > { %249 = vadd.xlane.f32.xlu0 %v903_v2  ;;  %253 = vadd.xlane.f32.xlu1 %v905_v3  ;;  %v366_v36 = vld [vmem:[%s988_s4] sm:$0x1]  ;;  %v449_v43 = vsub.s32 0, %v267_v11  ;;  %s475_s25 = scalar_lea.sflag [#allocation4], %s887_s23  ;;  %s687_s7 = scalar_lea.vmem %s936_s14, 512 }
  0x3b   : > { %590 = vmatpush3.msra.mxu0 %v257_v6  ;;  %v273_v18 = vsub.s32 %v270_v12, %v267_v11  ;;  %v287_v19 = vsub.s32 %v284_v13, %v267_v11  ;;  %v280_v20 = vsub.s32 %v277_v14, %v267_v11  ;;  %599 = vmatpush3.msra.mxu1 %v365_v30  ;;  %p688_p10 = scmp.ne.s32.totalorder %s936_s14, %s687_s7  ;;  %p998_p11 = scmp.ne.s32.totalorder %s994_s30, 0 }
  0x3c   : > { %591 = vmatprep.subr.mxu0 %v756_v5  ;;  %s758_s22 = smov [#allocation5]  }
  0x3d   : > { %592 = vmatpush3.msra.mxu0 %v256_v7  ;;  %p689_p12 = pnand %p688_p10, %p998_p11  ;;  %s691_s9 = sshll.u32 %s758_s22, 4  ;;  %s692_s9 = int_to_ptr.vmem [resolvable:$false] %s691_s9 }
  0x3e   : > { %593 = vmatprep.subr.mxu0 %v756_v5  ;;  %s693_s10 = scalar_lea.vmem %s692_s9, 1024  ;;  %p694_p5 = scmp.lt.s32.totalorder %s936_s14, %s692_s9 }
  0x3f   : > { %594 = vmatpush3.msra.mxu0 %v255_v8  ;;  %p690_p4 = pneg %p689_p12  ;;  %p695_p7 = scmp.lt.s32.totalorder %s693_s10, %s687_s7 }
  0x41   : > { %p696_p8 = por %p695_p7, %p694_p5 }
  0x43   : > { %p697_p9 = pnand %p696_p8, %p690_p4 }
  0xbf   : > { %v248_v15 = vpop.xlane.xlu0 %247  ;;  %v252_v16 = vpop.xlane.xlu1 %251 }
  0xc0   : > { %v269_v23 = vrot.slane %v248_v15, %v268_v17  ;;  %v281_v26 = vrot.slane %v252_v16, %v280_v20 }
  0xc3   : > { %v250_v21 = vpop.xlane.xlu0 %249  ;;  %v254_v22 = vpop.xlane.xlu1 %253 }
  0xc4   : > { %v274_v24 = vrot.slane %v250_v21, %v273_v18  ;;  %v288_v25 = vrot.slane %v254_v22, %v287_v19 }
  0xc6   : > { %v276_v27 = vsel %vm275_vm1, %v274_v24, %v269_v23 }
  0xc7   : > { %v283_v28 = vsel %vm282_vm2, %v281_v26, %v276_v27 }
  0xc8   : > { %v290_v29 = vsel %vm289_vm3, %v288_v25, %v283_v28 }
  0xc9   : > { %596 = vmatmul.mubr.msk.f32.vlgmr.msra.gmra.mxu0 %vm291_vm4, %v290_v29 }
 0x189   : > { %v360_v32 = vpop.f32.mrf.mxu0 }
 0x18a   : > { %v361_v33 = vadd.f32 %v360_v32, %v259_v31 }
 0x18b   : > { %v597_v34 = vpop.f32.mrf.mxu0 }
 0x18c   : > { %v364_v35 = vmax.f32 %v361_v33, 0.0 }
 0x18e   : > { %601 = vmatmul.mubr.msk.f32.vlgmr.msra.gmra.mxu1 %vm367_vm5, %v364_v35 }
 0x24e   : > { %v437_v37 = vpop.f32.mrf.mxu1 }
 0x24f   : > { %v438_v38 = vadd.f32 %v437_v37, %v366_v36 }
 0x250   : > { %v602_v39 = vpop.f32.mrf.mxu1 }
 0x251   : > { %v572_v40 = vmul.f32 -1.442695, %v438_v38 }
 0x253   : > { %655 = vpow2.f32 %v572_v40 }
 0x260   : > { %v656_v41 = vpop.eup %655 }
 0x261   : > { %v444_v42 = vadd.f32 1.0, %v656_v41 }
 0x263   : > { %657 = vrcp.f32 %v444_v42 }
 0x270   : > { %v658_v44 = vpop.eup %657 }
 0x271   : > { %v450_v45 = vrot.slane %v658_v44, %v449_v43 }
 0x273   : > { %456 = vbcast.lane.b32.xlu1 %v450_v45, 264  ;;  %452 = vbcast.lane.b32.xlu0 %v450_v45, 256 }
 0x277   : > { %460 = vbcast.lane.b32.xlu1 %v450_v45, 272 }
 0x27b   : > { %464 = vbcast.lane.b32.xlu1 %v450_v45, 280 }
 0x2e5   : > { %v457_v46 = vpop.permute.xlu1 %456  ;;  %v453_v47 = vpop.permute.xlu0 %452 }
 0x2e6   : > { %v467_v48 = vmul.f32 %v457_v46, %v903_v2  ;;  %v466_v49 = vmul.f32 %v453_v47, %v897_v0 }
 0x2e8   : > { %471 = vst [vmem:[%s242_s12 + $0x8] sm:$0xff] %v467_v48  ;;  %470 = vst [vmem:[%s242_s12] sm:$0xff] %v466_v49 }
 0x2e9   : > { %v461_v50 = vpop.permute.xlu1 %460 }
 0x2ea   : > { %v468_v51 = vmul.f32 %v461_v50, %v899_v1 }
 0x2ec   : > { %472 = vst [vmem:[%s242_s12 + $0x10] sm:$0xff] %v468_v51 }
 0x2ed   : > { %v465_v52 = vpop.permute.xlu1 %464 }
 0x2ee   : > { %v469_v53 = vmul.f32 %v465_v52, %v905_v3 }
 0x2f0   : > { %473 = vst [vmem:[%s242_s12 + $0x18] sm:$0xff] %v469_v53 }
 0x2f1   : > { %700 = shalt.err (!%p697_p9)
}
 0x2f2   : > { %s701_s11 = scalar_lea.hbm %s941_s8, 512  ;;  %s705_s26 = scalar_lea.hbm %s989_s5, 2048 }
 0x2f3   : > { %p702_p13 = scmp.ne.s32.totalorder %s941_s8, %s701_s11  ;;  %p706_p2 = scmp.lt.s32.totalorder %s941_s8, %s989_s5 }
 0x2f4   : > { %p707_p3 = scmp.lt.s32.totalorder %s705_s26, %s701_s11 }
 0x2f5   : > { %p703_p1 = pnand %p702_p13, %p998_p11 }
 0x2f6   : > { %p708_p6 = por %p707_p3, %p706_p2 }
 0x2f7   : > { %p704_p0 = pneg %p703_p1 }
 0x2f9   : > { %p709_p10 = pnand %p708_p6, %p704_p0 }
 0x2fb   : > { %712 = shalt.err (!%p709_p10)
}
 0x2fc   : > { %s759_s29 = smov 128   ;;  %s760_s15 = smov 8  }
 0x2fd   : > { %605 = dma.vmem_to_hbm [thread:$0]  (%p998_p11), %s936_s14, 512, %s941_s8, %s475_s25, %s759_s29, %s759_s29, %s760_s15  }
 0x2fe PF: > { %p616_p12 = scmp.ge.s32.totalorder %s751_s21, 2  ;;  %s503_s16 = sand.u32 1, %s739_s18  }
 0x2ff   : > { %p999_p4 = scmp.ne.s32.totalorder %s995_s6, 0  ;;  %s504_s7 = scalar_lea.sflag [#allocation4], %s503_s16 }
 0x301   : > { %p612_p5 = pnand %p616_p12, %p999_p4 }
 0x303   : > { %p613_p7 = pneg %p612_p5 }
 0x305   : > { %734 = dma.done.wait (%p613_p7), %s504_s7, 512  }
 0x306   : > { %736 = vsyncadd (%p613_p7), %s504_s7, 4294966784  ;;  %p18_p8 = scmp.ge.s32.totalorder %s816_s24, 6   ;;  %s1000_s18 = smov %s743_s19 }
 0x307   : > { %s1001_s19 = smov %s747_s20  ;;  %s1002_s20 = smov %s828_s27 }
 0x308   : > { %s1003_s21 = smov %s816_s24  ;;  %20 = sbr.rel (!%p18_p8) target bundleno = 5 (0x5), region = 85 }
 0x30d   :  { %509 = vsyncpa [#allocation3], 1 }
 0x30e   :  { %511 = vsyncpa [#allocation3 + $0x1], 1 }
 0x30f   :  { %512 = vsyncpa [#allocation4], 1 }
 0x310   :  { %514 = vsyncpa [#allocation4 + $0x1], 1 }

</bundles_post_ra>
